<compile_context>
chip_gen: v7x
topology: tpu7x:2x2x1
jax: 0.10.0
libtpu: 0.0.40
codegen_flags: <defaults>
</compile_context>

<pallas_src>
import functools

import jax
import jax.numpy as jnp
from jax.experimental import pallas as pl
from jax.experimental.pallas import tpu as pltpu


def _cdiv(a, b):
    return -(-a // b)


# ---------------------------------------------------------------------------
# Generation-dependent budgets
# ---------------------------------------------------------------------------
_BUDGET_CACHE = None


def _tpu_budgets():
    """Per-generation tile / VMEM budgets (conservative default = v7x-safe)."""
    global _BUDGET_CACHE
    if _BUDGET_CACHE is not None:
        return _BUDGET_CACHE
    vmem_bytes = 64 * 1024 * 1024
    try:
        info = pltpu.get_tpu_info()
        vmem_bytes = int(getattr(info, "vmem_capacity_bytes", vmem_bytes))
    except Exception:
        pass
    if vmem_bytes >= 100 * 1024 * 1024:
        # v5e / v6e: 128 MiB VMEM, single TensorCore -> big blocks, few steps.
        _BUDGET_CACHE = dict(
            vmem_limit=96 * 1024 * 1024,
            block_budget=40 * 1024 * 1024,   # one (score+truth+out) block set
            step_bytes=20 * 1024 * 1024,     # target HBM traffic per grid step
            min_steps=2,
        )
    else:
        # v7x (64 MiB per TC, 2 TCs) or unknown: cap blocks, keep >= 8 steps.
        _BUDGET_CACHE = dict(
            vmem_limit=48 * 1024 * 1024,
            block_budget=22 * 1024 * 1024,
            step_bytes=12 * 1024 * 1024,
            min_steps=8,
        )
    return _BUDGET_CACHE


# ---------------------------------------------------------------------------
# Kernels: lane-dense 4-D layout (B, C, M, 128), blocks (TB, C, TM, 128)
# ---------------------------------------------------------------------------
def _cat_dot_kernel_implicit_4d(score_ref, truth_ref, out_ref):
    """truth has C-1 channels; background channel is 1 - sum(truth)."""
    tb = out_ref.shape[0]
    ct = truth_ref.shape[1]          # = C - 1
    for b in range(tb):
        tsum = None
        for c in range(ct):
            t = truth_ref[b, c].astype(jnp.float32)          # (TM, 128) dense
            s = score_ref[b, c].astype(jnp.float32)
            out_ref[b, c] = (s * t).astype(out_ref.dtype)     # dense store
            tsum = t if tsum is None else tsum + t            # VPU add
        bg = jnp.float32(1.0) if tsum is None else 1.0 - tsum
        s_bg = score_ref[b, ct].astype(jnp.float32)
        out_ref[b, ct] = (s_bg * bg).astype(out_ref.dtype)


def _cat_dot_kernel_explicit_4d(score_ref, truth_ref, out_ref, *, approx):
    """truth has C channels; normalize to sum to one along channels."""
    tb = out_ref.shape[0]
    nc = out_ref.shape[1]
    for b in range(tb):
        tsum = truth_ref[b, 0].astype(jnp.float32)
        for c in range(1, nc):
            tsum = tsum + truth_ref[b, c].astype(jnp.float32)
        # NOTE: like the PyTorch reference, an all-zero truth column -> inf/NaN.
        inv = pl.reciprocal(tsum, approx=approx)
        for c in range(nc):
            s = score_ref[b, c].astype(jnp.float32)
            t = truth_ref[b, c].astype(jnp.float32)
            out_ref[b, c] = (s * t * inv).astype(out_ref.dtype)


# ---------------------------------------------------------------------------
# Kernels: 3-D fallback layout (B, C, N) for N not a multiple of 128
# (channels on sublanes; no wrapper pad -- Pallas masks the ragged last block)
# ---------------------------------------------------------------------------
def _cat_dot_kernel_implicit_3d(score_ref, truth_ref, out_ref):
    score = score_ref[0].astype(jnp.float32)                  # (C, TN)
    truth = truth_ref[0].astype(jnp.float32)                  # (C-1, TN)
    tsum = jnp.sum(truth, axis=0, keepdims=True)              # (1, TN)
    truth_full = jnp.concatenate([truth, 1.0 - tsum], axis=0)
    out_ref[0] = (score * truth_full).astype(out_ref.dtype)   # single full store


def _cat_dot_kernel_explicit_3d(score_ref, truth_ref, out_ref, *, approx):
    score = score_ref[0].astype(jnp.float32)                  # (C, TN)
    truth = truth_ref[0].astype(jnp.float32)                  # (C, TN)
    tsum = jnp.sum(truth, axis=0, keepdims=True)              # (1, TN)
    inv = pl.reciprocal(tsum, approx=approx)
    out_ref[0] = (score * truth * inv).astype(out_ref.dtype)


# ---------------------------------------------------------------------------
# Tile selection
# ---------------------------------------------------------------------------
def _choose_tile_4d(b, m, row_bytes, budgets):
    """Pick (TB, TM) for blocks (TB, C, TM, 128).

    row_bytes = bytes of one 128-lane row across all channels of all arrays.
    TM is a multiple of 32 (dense for f32/bf16/int8 sublane tiles) unless it
    equals the full M extent.
    """
    max_tm = max(budgets["block_budget"] // max(row_bytes, 1), 32)
    tgt_tm = max(budgets["step_bytes"] // max(row_bytes, 1), 32)
    tm = min(m, max_tm, tgt_tm)
    if tm < m:
        tm = max(32, (tm // 32) * 32)
    tb = 1
    if tm == m:
        # whole spatial extent fits one block: fold batches to reach the
        # per-step byte target (op is independent per (b, column)).
        per_batch = max(m * row_bytes, 1)
        tb = min(b,
                 max(1, budgets["step_bytes"] // per_batch),
                 max(1, budgets["block_budget"] // per_batch))

    def steps(tb_, tm_):
        return _cdiv(b, tb_) * _cdiv(m, tm_)

    while steps(tb, tm) < budgets["min_steps"] and tb > 1:
        tb = _cdiv(tb, 2)
    while steps(tb, tm) < budgets["min_steps"] and tm > 32:
        tm = max(32, ((tm // 2) // 32) * 32)
    return tb, tm


def _padded_rows(c, dtype):
    """Channel rows after sublane-tile rounding (8 for 4B, 16 for 2B, 32 for 1B)."""
    itemsize = max(jnp.dtype(dtype).itemsize, 1)
    sub = max(8, 32 // itemsize)
    return _cdiv(max(c, 1), sub) * sub


def _choose_tile_3d(b, n, bytes_per_lane, budgets):
    """Largest lane tile (multiple of 128) fitting the (padding-aware) budget."""
    n128 = _cdiv(max(n, 1), 128) * 128
    max_tn = max(budgets["block_budget"] // max(bytes_per_lane, 1), 128)
    tgt_tn = max(budgets["step_bytes"] // max(bytes_per_lane, 1), 128)
    tn = min(n128, max_tn, tgt_tn)
    tn = max(128, (tn // 128) * 128)
    while b * _cdiv(n128, tn) < budgets["min_steps"] and tn > 128:
        tn = max(128, ((tn // 2) // 128) * 128)
    return tn


# ---------------------------------------------------------------------------
# Wrapper
# ---------------------------------------------------------------------------
@jax.jit
def cat_dot_product(score, truth):
    """Pallas implementation of CatDotProduct.forward (soft-label path).

    score : (B, C, *spatial) float
    truth : (B, C or C-1, *spatial) float
    returns loss of shape (B, C, *spatial), dtype == score.dtype
    """
    if not jnp.issubdtype(truth.dtype, jnp.floating):
        # TODO(synk): hard integer-label path (one_hot_map / isin) not implemented.
        raise NotImplementedError("Hard integer-label truth is not supported.")

    B, C = score.shape[0], score.shape[1]
    spatial = score.shape[2:]
    N = 1
    for s in spatial:
        N *= s
    Ct = truth.shape[1]
    implicit = Ct == C - 1
    if not implicit and Ct != C:
        raise ValueError("Number of classes not consistent.")

    out_dtype = score.dtype
    isz_s = jnp.dtype(score.dtype).itemsize
    isz_t = jnp.dtype(truth.dtype).itemsize
    isz_o = jnp.dtype(out_dtype).itemsize

    budgets = _tpu_budgets()
    # Approx reciprocal (EUP) is below bf16/f16 output precision; keep exact
    # reciprocal when emitting f32 for strict parity with the reference.
    approx = isz_o < 4

    compiler_params = pltpu.CompilerParams(
        dimension_semantics=("parallel", "parallel"),
        vmem_limit_bytes=budgets["vmem_limit"],
    )

    if N >= 128 and N % 128 == 0:
        # ---- lane-dense path: (B, C, M, 128), metadata-only reshape --------
        M = N // 128
        score_f = score.reshape(B, C, M, 128)
        truth_f = truth.reshape(B, Ct, M, 128)
        row_bytes = 128 * (C * isz_s + Ct * isz_t + C * isz_o)
        tb, tm = _choose_tile_4d(B, M, row_bytes, budgets)
        grid = (_cdiv(B, tb), _cdiv(M, tm))

        if implicit:
            kernel = _cat_dot_kernel_implicit_4d
        else:
            kernel = functools.partial(_cat_dot_kernel_explicit_4d, approx=approx)

        out = pl.pallas_call(
            kernel,
            out_shape=jax.ShapeDtypeStruct((B, C, M, 128), out_dtype),
            grid_spec=pl.GridSpec(
                grid=grid,
                in_specs=[
                    pl.BlockSpec((tb, C, tm, 128), lambda b, m: (b, 0, m, 0)),
                    pl.BlockSpec((tb, Ct, tm, 128), lambda b, m: (b, 0, m, 0)),
                ],
                out_specs=pl.BlockSpec((tb, C, tm, 128), lambda b, m: (b, 0, m, 0)),
            ),
            compiler_params=compiler_params,
        )(score_f, truth_f)
        return out.reshape(score.shape)

    # ---- ragged path: (B, C, N), no pad/slice; Pallas masks the last block --
    score_f = score.reshape(B, C, N)
    truth_f = truth.reshape(B, Ct, N)
    bytes_per_lane = (_padded_rows(C, score.dtype) * isz_s
                      + _padded_rows(Ct, truth.dtype) * isz_t
                      + _padded_rows(C, out_dtype) * isz_o)
    tn = _choose_tile_3d(B, N, bytes_per_lane, budgets)
    grid = (B, _cdiv(N, tn))

    if implicit:
        kernel = _cat_dot_kernel_implicit_3d
    else:
        kernel = functools.partial(_cat_dot_kernel_explicit_3d, approx=approx)

    out = pl.pallas_call(
        kernel,
        out_shape=jax.ShapeDtypeStruct((B, C, N), out_dtype),
        grid_spec=pl.GridSpec(
            grid=grid,
            in_specs=[
                pl.BlockSpec((1, C, tn), lambda b, n: (b, 0, n)),
                pl.BlockSpec((1, Ct, tn), lambda b, n: (b, 0, n)),
            ],
            out_specs=pl.BlockSpec((1, C, tn), lambda b, n: (b, 0, n)),
        ),
        compiler_params=compiler_params,
    )(score_f, truth_f)
    return out.reshape(score.shape)


# ---------------------------------------------------------------------------
# Pure-JAX reference
# ---------------------------------------------------------------------------
def _reference(score, truth):
    C = score.shape[1]
    score32 = score.astype(jnp.float32)
    truth32 = truth.astype(jnp.float32)
    if truth.shape[1] == C - 1:
        pad = 1.0 - jnp.sum(truth32, axis=1, keepdims=True)
        truth_full = jnp.concatenate([truth32, pad], axis=1)
    else:
        truth_full = truth32 / jnp.sum(truth32, axis=1, keepdims=True)
    return score32 * truth_full


if __name__ == "__main__":
    key = jax.random.PRNGKey(0)
    k1, k2, k3, k4, k5 = jax.random.split(key, 5)

    B, C, H, W = 2, 4, 16, 16

    # Pre-transformed scores.
    score = jax.random.normal(k1, (B, C, H, W), dtype=jnp.float32)

    # Implicit soft truth: C-1 channels, probabilities summing to <= 1.
    truth_implicit = 0.3 * jax.random.uniform(k2, (B, C - 1, H, W), dtype=jnp.float32)

    # Explicit soft truth: C positive channels (normalized inside the kernel).
    truth_explicit = jax.random.uniform(
        k3, (B, C, H, W), dtype=jnp.float32, minval=0.1, maxval=1.0
    )

    out_imp = jax.block_until_ready(cat_dot_product(score, truth_implicit))
    out_exp = jax.block_until_ready(cat_dot_product(score, truth_explicit))

    ref_imp = _reference(score, truth_implicit)
    ref_exp = _reference(score, truth_explicit)

    assert out_imp.shape == (B, C, H, W)
    assert out_exp.shape == (B, C, H, W)
    assert jnp.allclose(out_imp, ref_imp, atol=1e-5, rtol=1e-5)
    assert jnp.allclose(out_exp, ref_exp, atol=1e-5, rtol=1e-5)

    # Non-multiple-of-128 spatial extent exercises the ragged 3-D path
    # (no wrapper-side pad/slice; Pallas masks the partial last block).
    H2, W2 = 15, 15
    score_odd = jax.random.normal(k4, (B, C, H2, W2), dtype=jnp.float32)
    truth_odd = 0.3 * jax.random.uniform(k5, (B, C - 1, H2, W2), dtype=jnp.float32)
    out_odd = jax.block_until_ready(cat_dot_product(score_odd, truth_odd))
    ref_odd = _reference(score_odd, truth_odd)
    assert out_odd.shape == (B, C, H2, W2)
    assert jnp.allclose(out_odd, ref_odd, atol=1e-5, rtol=1e-5)

    # Ragged explicit path as well.
    truth_odd_exp = jax.random.uniform(
        k5, (B, C, H2, W2), dtype=jnp.float32, minval=0.1, maxval=1.0
    )
    out_odd_exp = jax.block_until_ready(cat_dot_product(score_odd, truth_odd_exp))
    ref_odd_exp = _reference(score_odd, truth_odd_exp)
    assert jnp.allclose(out_odd_exp, ref_odd_exp, atol=1e-5, rtol=1e-5)

    # Native bf16 path (no wrapper-side f32 staging); loose tolerance for bf16.
    score_bf = score.astype(jnp.bfloat16)
    truth_bf = truth_implicit.astype(jnp.bfloat16)
    out_bf = jax.block_until_ready(cat_dot_product(score_bf, truth_bf))
    assert out_bf.dtype == jnp.bfloat16
    ref_bf = _reference(score_bf, truth_bf)
    assert jnp.allclose(out_bf.astype(jnp.float32), ref_bf, atol=5e-2, rtol=5e-2)

    print("KERNEL_OK")
</pallas_src>

<mosaic_0001>
module attributes {stable_mosaic.version = 11 : i64} {
  func.func @_cat_dot_kernel_implicit_4d(%arg0: i32, %arg1: i32, %arg2: memref<1x4x2x128xf32, #tpu.memory_space<vmem>>, %arg3: memref<1x3x2x128xf32, #tpu.memory_space<vmem>>, %arg4: memref<1x4x2x128xf32, #tpu.memory_space<vmem>>) attributes {dimension_semantics = [#tpu.dimension_semantics<parallel>, #tpu.dimension_semantics<parallel>], iteration_bounds = array<i64: 2, 1>, scalar_prefetch = 0 : i64, scratch_operands = 0 : i64, tpu.core_type = #tpu.core_type<tc>, window_params = [{transform_indices = @transform_0, window_bounds = array<i64: 1, 4, 2, 128>}, {transform_indices = @transform_1, window_bounds = array<i64: 1, 3, 2, 128>}, {transform_indices = @transform_2, window_bounds = array<i64: 1, 4, 2, 128>}]} {
    %c0 = arith.constant 0 : index
    %c0_0 = arith.constant 0 : index
    %c0_1 = arith.constant 0 : index
    %c0_2 = arith.constant 0 : index
    %0 = vector.load %arg3[%c0, %c0_0, %c0_1, %c0_2] : memref<1x3x2x128xf32, #tpu.memory_space<vmem>>, vector<1x1x2x128xf32>
    %1 = vector.shape_cast %0 : vector<1x1x2x128xf32> to vector<2x128xf32>
    %c0_3 = arith.constant 0 : index
    %c0_4 = arith.constant 0 : index
    %c0_5 = arith.constant 0 : index
    %c0_6 = arith.constant 0 : index
    %2 = vector.load %arg2[%c0_3, %c0_4, %c0_5, %c0_6] : memref<1x4x2x128xf32, #tpu.memory_space<vmem>>, vector<1x1x2x128xf32>
    %3 = vector.shape_cast %2 : vector<1x1x2x128xf32> to vector<2x128xf32>
    %4 = arith.mulf %3, %1 : vector<2x128xf32>
    %c0_7 = arith.constant 0 : index
    %c0_8 = arith.constant 0 : index
    %c0_9 = arith.constant 0 : index
    %c0_10 = arith.constant 0 : index
    %5 = vector.load %arg4[%c0_7, %c0_8, %c0_9, %c0_10] : memref<1x4x2x128xf32, #tpu.memory_space<vmem>>, vector<1x1x2x128xf32>
    %6 = vector.shape_cast %5 : vector<1x1x2x128xf32> to vector<2x128xf32>
    %7 = vector.shape_cast %4 : vector<2x128xf32> to vector<1x1x2x128xf32>
    tpu.vector_store %arg4[%c0_7, %c0_8, %c0_9, %c0_10], %7 {strides = array<i32>} : memref<1x4x2x128xf32, #tpu.memory_space<vmem>>, vector<1x1x2x128xf32>,
    %c0_11 = arith.constant 0 : index
    %c1 = arith.constant 1 : index
    %c0_12 = arith.constant 0 : index
    %c0_13 = arith.constant 0 : index
    %8 = vector.load %arg3[%c0_11, %c1, %c0_12, %c0_13] : memref<1x3x2x128xf32, #tpu.memory_space<vmem>>, vector<1x1x2x128xf32>
    %9 = vector.shape_cast %8 : vector<1x1x2x128xf32> to vector<2x128xf32>
    %c0_14 = arith.constant 0 : index
    %c1_15 = arith.constant 1 : index
    %c0_16 = arith.constant 0 : index
    %c0_17 = arith.constant 0 : index
    %10 = vector.load %arg2[%c0_14, %c1_15, %c0_16, %c0_17] : memref<1x4x2x128xf32, #tpu.memory_space<vmem>>, vector<1x1x2x128xf32>
    %11 = vector.shape_cast %10 : vector<1x1x2x128xf32> to vector<2x128xf32>
    %12 = arith.mulf %11, %9 : vector<2x128xf32>
    %c0_18 = arith.constant 0 : index
    %c1_19 = arith.constant 1 : index
    %c0_20 = arith.constant 0 : index
    %c0_21 = arith.constant 0 : index
    %13 = vector.load %arg4[%c0_18, %c1_19, %c0_20, %c0_21] : memref<1x4x2x128xf32, #tpu.memory_space<vmem>>, vector<1x1x2x128xf32>
    %14 = vector.shape_cast %13 : vector<1x1x2x128xf32> to vector<2x128xf32>
    %15 = vector.shape_cast %12 : vector<2x128xf32> to vector<1x1x2x128xf32>
    tpu.vector_store %arg4[%c0_18, %c1_19, %c0_20, %c0_21], %15 {strides = array<i32>} : memref<1x4x2x128xf32, #tpu.memory_space<vmem>>, vector<1x1x2x128xf32>,
    %16 = arith.addf %1, %9 : vector<2x128xf32>
    %c0_22 = arith.constant 0 : index
    %c2 = arith.constant 2 : index
    %c0_23 = arith.constant 0 : index
    %c0_24 = arith.constant 0 : index
    %17 = vector.load %arg3[%c0_22, %c2, %c0_23, %c0_24] : memref<1x3x2x128xf32, #tpu.memory_space<vmem>>, vector<1x1x2x128xf32>
    %18 = vector.shape_cast %17 : vector<1x1x2x128xf32> to vector<2x128xf32>
    %c0_25 = arith.constant 0 : index
    %c2_26 = arith.constant 2 : index
    %c0_27 = arith.constant 0 : index
    %c0_28 = arith.constant 0 : index
    %19 = vector.load %arg2[%c0_25, %c2_26, %c0_27, %c0_28] : memref<1x4x2x128xf32, #tpu.memory_space<vmem>>, vector<1x1x2x128xf32>
    %20 = vector.shape_cast %19 : vector<1x1x2x128xf32> to vector<2x128xf32>
    %21 = arith.mulf %20, %18 : vector<2x128xf32>
    %c0_29 = arith.constant 0 : index
    %c2_30 = arith.constant 2 : index
    %c0_31 = arith.constant 0 : index
    %c0_32 = arith.constant 0 : index
    %22 = vector.load %arg4[%c0_29, %c2_30, %c0_31, %c0_32] : memref<1x4x2x128xf32, #tpu.memory_space<vmem>>, vector<1x1x2x128xf32>
    %23 = vector.shape_cast %22 : vector<1x1x2x128xf32> to vector<2x128xf32>
    %24 = vector.shape_cast %21 : vector<2x128xf32> to vector<1x1x2x128xf32>
    tpu.vector_store %arg4[%c0_29, %c2_30, %c0_31, %c0_32], %24 {strides = array<i32>} : memref<1x4x2x128xf32, #tpu.memory_space<vmem>>, vector<1x1x2x128xf32>,
    %25 = arith.addf %16, %18 : vector<2x128xf32>
    %cst = arith.constant 1.000000e+00 : f32
    %26 = vector.broadcast %cst : f32 to vector<2x128xf32>
    %27 = arith.subf %26, %25 : vector<2x128xf32>
    %c0_33 = arith.constant 0 : index
    %c3 = arith.constant 3 : index
    %c0_34 = arith.constant 0 : index
    %c0_35 = arith.constant 0 : index
    %28 = vector.load %arg2[%c0_33, %c3, %c0_34, %c0_35] : memref<1x4x2x128xf32, #tpu.memory_space<vmem>>, vector<1x1x2x128xf32>
    %29 = vector.shape_cast %28 : vector<1x1x2x128xf32> to vector<2x128xf32>
    %30 = arith.mulf %29, %27 : vector<2x128xf32>
    %c0_36 = arith.constant 0 : index
    %c3_37 = arith.constant 3 : index
    %c0_38 = arith.constant 0 : index
    %c0_39 = arith.constant 0 : index
    %31 = vector.load %arg4[%c0_36, %c3_37, %c0_38, %c0_39] : memref<1x4x2x128xf32, #tpu.memory_space<vmem>>, vector<1x1x2x128xf32>
    %32 = vector.shape_cast %31 : vector<1x1x2x128xf32> to vector<2x128xf32>
    %33 = vector.shape_cast %30 : vector<2x128xf32> to vector<1x1x2x128xf32>
    tpu.vector_store %arg4[%c0_36, %c3_37, %c0_38, %c0_39], %33 {strides = array<i32>} : memref<1x4x2x128xf32, #tpu.memory_space<vmem>>, vector<1x1x2x128xf32>,
    return
  }
  func.func @transform_0(%arg0: i32, %arg1: i32) -> (i32, i32, i32, i32) {
    %c0_i32 = arith.constant 0 : i32
    %c0_i32_0 = arith.constant 0 : i32
    %c0_i32_1 = arith.constant 0 : i32
    return %arg0, %c0_i32, %arg1, %c0_i32_0 : i32, i32, i32, i32
  }
  func.func @transform_1(%arg0: i32, %arg1: i32) -> (i32, i32, i32, i32) {
    %c0_i32 = arith.constant 0 : i32
    %c0_i32_0 = arith.constant 0 : i32
    %c0_i32_1 = arith.constant 0 : i32
    return %arg0, %c0_i32, %arg1, %c0_i32_0 : i32, i32, i32, i32
  }
  func.func @transform_2(%arg0: i32, %arg1: i32) -> (i32, i32, i32, i32) {
    %c0_i32 = arith.constant 0 : i32
    %c0_i32_0 = arith.constant 0 : i32
    %c0_i32_1 = arith.constant 0 : i32
    return %arg0, %c0_i32, %arg1, %c0_i32_0 : i32, i32, i32, i32
  }
}

</mosaic_0001>

<bundles_post_ra>
// kernel: cat_dot_product.1
= control target key start
LH: loop header
LB: loop body
LE: loop exit
PB: predicated region body
PF: predicated region fallthrough
CT: control target
= control target key end

     0   :  { %s419_s9 = smov 0   ;;  %s421_s10 = smov 0   ;;  %s455_s0 = inlined_call_operand.vmem [shape: f32[2,4,2,128], index: 0, kind: input, shape index: {}]   ;;  %s456_s1 = inlined_call_operand.vmem [shape: f32[2,3,2,128], index: 1, kind: input, shape index: {}]   ;;  %s457_s2 = inlined_call_operand.vmem [shape: f32[2,4,2,128], index: 2, kind: output, shape index: {}]  }
   0x1   :  { %s423_s11 = smov 0  }
   0x2 LB: > { %s24_s12 = sadd.s32 1, %s398_s10  ;;  %p337_p0 = scmp.ge.s32.totalorder %s402_s11, 1  ;;  %s402_s11 = sphi %s423_s11, %s12_s11   ;;  %s398_s10 = sphi %s421_s10, %s459_s10   ;;  %s394_s9 = sphi %s419_s9, %s458_s9  }
   0x3   : > { %p26_p1 = scmp.ge.s32.totalorder %s24_s12, 2  ;;  %p146_p2 = scmp.lt.s32.totalorder %s402_s11, 3 }
   0x5   : > { %s461_s12 = smov (%p26_p1, %s24_s12), 0  ;;  %p147_p3 = pnand %p337_p0, %p146_p2 }
   0x6   : > { %p182_p4 = scmp.lt.s32.totalorder (!%p147_p3), %s394_s9, 1 }
   0x7   : > { %150 = sbr.rel (%p147_p3) target bundleno = 28 (0x1c), region = 28 }
   0xe   : > { %s463_s9 = smov (!%p182_p4, %s394_s9), 1 }
   0xf   : > { %s353_s13 = sshll.u32 %s463_s9, 3  ;;  %s355_s14 = smul.u32 6, %s463_s9 }
  0x10   : > { %s189_s17 = scalar_lea.vmem %s455_s0, %s353_s13  ;;  %s205_s23 = scalar_lea.vmem %s457_s2, %s353_s13 }
  0x11   : > { %s197_s20 = scalar_lea.vmem %s456_s1, %s355_s14  ;;  %v207_v0 = vld [vmem:[%s189_s17] sm:$0x3]  ;;  %v344_v1 = vld [vmem:[%s189_s17 + $0x2] sm:$0x3]  ;;  %v347_v2 = vld [vmem:[%s189_s17 + $0x4] sm:$0x3] }
  0x12   : > { %v206_v3 = vld [vmem:[%s197_s20] sm:$0x3]  ;;  %v343_v4 = vld [vmem:[%s197_s20 + $0x2] sm:$0x3]  ;;  %v346_v5 = vld [vmem:[%s197_s20 + $0x4] sm:$0x3] }
  0x13   : > { %v208_v6 = vmul.f32 %v207_v0, %v206_v3  ;;  %v214_v7 = vmul.f32 %v344_v1, %v343_v4  ;;  %v217_v8 = vadd.f32 %v343_v4, %v206_v3  ;;  %v222_v9 = vmul.f32 %v347_v2, %v346_v5  ;;  %v349_v11 = vld [vmem:[%s189_s17 + $0x6] sm:$0x3] }
  0x15   : > { %209 = vst [vmem:[%s205_s23] sm:$0x3] %v208_v6  ;;  %345 = vst [vmem:[%s205_s23 + $0x2] sm:$0x3] %v214_v7  ;;  %v225_v10 = vadd.f32 %v346_v5, %v217_v8 }
  0x16   : > { %348 = vst [vmem:[%s205_s23 + $0x4] sm:$0x3] %v222_v9 }
  0x17   : > { %v226_v12 = vsub.f32 1.0, %v225_v10 }
  0x19   : > { %v229_v13 = vmul.f32 %v349_v11, %v226_v12 }
  0x1b   : > { %350 = vst [vmem:[%s205_s23 + $0x6] sm:$0x3] %v229_v13 }
  0x1c PF: > { %s12_s11 = sadd.s32 1, %s402_s11   ;;  %s458_s9 = smov %s398_s10 }
  0x1d   : > { %p9_p5 = scmp.ge.s32.totalorder %s12_s11, 4   ;;  %s459_s10 = smov %s461_s12 }
  0x1f   :  { %11 = sbr.rel (!%p9_p5) target bundleno = 2 (0x2), region = 69 }

</bundles_post_ra>
